<compile_context>
chip_gen: v5e
topology: v5e:2x2
jax: 0.10.0
libtpu: 0.0.40
codegen_flags: <defaults>
</compile_context>

<pallas_src>
import math

import jax
import jax.numpy as jnp
from jax.experimental import pallas as pl
from jax.experimental.pallas import tpu as pltpu


def attn_pool_kernel(src_ref, bias_ref, wt_ref, u_ref, o_ref):
    # src_ref : (B, L, H) bf16   batch tile of the input
    # bias_ref: (B, L)    f32    additive mask bias = (mask - 1) * 1e4
    # wt_ref  : (H, H)    bf16   W^T  (y = x @ W^T, matching nn.Linear)
    # u_ref   : (1, H)    f32    U row, pre-scaled by 1/sqrt(H)
    # o_ref   : (B, H)    f32
    B, L, H = src_ref.shape
    src = src_ref[...]                                                # (B, L, H) bf16

    # One bf16 MXU matmul for the whole tile (batch folded into M), f32 accumulation.
    t = jnp.tanh(jnp.dot(src.reshape(B * L, H), wt_ref[...],
                         preferred_element_type=jnp.float32))         # (B*L, H) f32

    # U projection (scale already folded into u): lane reduction -> lane-dense (B, L).
    logit = jnp.sum(t.reshape(B, L, H) * u_ref[...], axis=-1)         # (B, L)
    logit = logit + bias_ref[...]                                     # mask bias

    # Softmax along lanes (L), vectorized over the B sublanes of the tile.
    logit = logit - jnp.max(logit, axis=-1, keepdims=True)
    e = jnp.exp(logit)
    prob = e * pl.reciprocal(jnp.sum(e, axis=-1, keepdims=True), approx=True)  # (B, L)

    # Weighted sum over L: VPU multiply + one sublane reduction -> lane-dense (B, H) store.
    pooled = jnp.sum(src.astype(jnp.float32) * prob[:, :, None], axis=1)       # (B, H)
    o_ref[...] = pooled


def _pick_batch_tile(n, l, h):
    # ~4 MiB of per-step activations; double-buffered this stays well under the
    # scoped-VMEM defaults (16 MiB v5e, 32 MiB v6e/v7x) and v7x's 64 MiB physical VMEM.
    budget = 4 * 1024 * 1024
    per_batch = l * h * 2 + l * 4 + h * 4            # bf16 src + f32 bias + f32 out
    cap = max(1, budget // per_batch)
    if n <= cap:
        return n                                     # whole batch in one grid step
    return max(8, (cap // 8) * 8)                    # (8,·)-aligned tile; batch gets padded


def attention_pooling_1d(src, mask, w, u, *, batch_tile=None):
    """src: (N, L, H), mask: (N, L) in {0,1}, w: (H, H) nn.Linear weight, u: (1, H)."""
    N, L, H = src.shape
    # One-time parameter / mask transforms (kept out of the per-element kernel path).
    wt = jnp.asarray(w, jnp.float32).T.astype(jnp.bfloat16)           # y = x @ W^T
    u_row = jnp.asarray(u, jnp.float32).reshape(1, H) / math.sqrt(H)  # fold 1/sqrt(H)
    bias = (jnp.asarray(mask, jnp.float32) - 1.0) * 10000.0           # (N, L)
    src_bf = jnp.asarray(src).astype(jnp.bfloat16)                    # (N, L, H)

    if batch_tile is None:
        batch_tile = _pick_batch_tile(N, L, H)
    n_pad = (-N) % batch_tile
    if n_pad:                                         # padded rows: zero src, zero bias
        src_bf = jnp.pad(src_bf, ((0, n_pad), (0, 0), (0, 0)))
        bias = jnp.pad(bias, ((0, n_pad), (0, 0)))
    n_total = N + n_pad
    grid = (n_total // batch_tile,)

    # Size the scoped-VMEM hint to the double-buffered working set (+ weights + slack).
    per_step = batch_tile * (L * H * 2 + L * 4 + H * 4)
    vmem_limit = int(max(32 * 1024 * 1024,
                         2 * per_step + 2 * (H * H * 2 + H * 4) + (1 << 20)))

    out = pl.pallas_call(
        attn_pool_kernel,
        out_shape=jax.ShapeDtypeStruct((n_total, H), jnp.float32),
        grid=grid,
        in_specs=[
            pl.BlockSpec((batch_tile, L, H), lambda i: (i, 0, 0)),    # src batch tile
            pl.BlockSpec((batch_tile, L), lambda i: (i, 0)),          # mask-bias tile
            pl.BlockSpec((H, H), lambda i: (0, 0)),                   # W^T (grid-invariant)
            pl.BlockSpec((1, H), lambda i: (0, 0)),                   # scaled U row
        ],
        out_specs=pl.BlockSpec((batch_tile, H), lambda i: (i, 0)),
        compiler_params=pltpu.CompilerParams(
            dimension_semantics=("parallel",),        # shard batch tiles across TCs (v7x)
            vmem_limit_bytes=vmem_limit),
    )(src_bf, bias, wt, u_row)
    return out[:N] if n_pad else out


def attention_pooling_1d_ref(src, mask, w, u):
    """Pure-JAX reference matching the PyTorch module."""
    t = jnp.tanh(jnp.einsum("nlh,kh->nlk", src, w))                   # W(x)
    logit = jnp.einsum("nlh,oh->nlo", t, u)[..., 0]                   # U(.), squeeze
    logit = logit / math.sqrt(src.shape[2])
    logit = logit - (1.0 - mask) * 10000.0
    prob = jax.nn.softmax(logit, axis=1)[..., None]
    return jnp.sum(src * prob, axis=1)


if __name__ == "__main__":
    key = jax.random.PRNGKey(0)
    k_src, k_w, k_u, k_src2, k_m2 = jax.random.split(key, 5)

    # --- primary check (module-scale shapes) -------------------------------
    N, L, H = 2, 16, 32
    src = jax.random.normal(k_src, (N, L, H), jnp.float32)
    lengths = jnp.array([L, L - 5], dtype=jnp.int32)
    mask = (jnp.arange(L, dtype=jnp.int32)[None, :]
            < lengths[:, None]).astype(jnp.float32)                   # (N, L)
    w = jax.random.normal(k_w, (H, H), jnp.float32) / math.sqrt(H)    # nn.Linear(H, H, bias=False)
    u = jax.random.normal(k_u, (1, H), jnp.float32) / math.sqrt(H)    # nn.Linear(H, 1, bias=False)

    out = attention_pooling_1d(src, mask, w, u)
    jax.block_until_ready(out)
    ref = attention_pooling_1d_ref(src, mask, w, u)
    assert out.shape == (N, H), out.shape
    assert bool(jnp.all(jnp.isfinite(out)))
    assert bool(jnp.allclose(out, ref, rtol=2e-2, atol=2e-2)), \
        float(jnp.max(jnp.abs(out - ref)))

    # --- gridded / padded path check (multi-step batch grid) ---------------
    N2 = 10
    src2 = jax.random.normal(k_src2, (N2, L, H), jnp.float32)
    len2 = jax.random.randint(k_m2, (N2,), 1, L + 1)
    mask2 = (jnp.arange(L, dtype=jnp.int32)[None, :]
             < len2[:, None]).astype(jnp.float32)
    out2 = attention_pooling_1d(src2, mask2, w, u, batch_tile=8)      # grid=(2,), padded
    jax.block_until_ready(out2)
    ref2 = attention_pooling_1d_ref(src2, mask2, w, u)
    assert out2.shape == (N2, H), out2.shape
    assert bool(jnp.all(jnp.isfinite(out2)))
    assert bool(jnp.allclose(out2, ref2, rtol=2e-2, atol=2e-2)), \
        float(jnp.max(jnp.abs(out2 - ref2)))

    print("KERNEL_OK")
</pallas_src>

<mosaic_0001>
module attributes {stable_mosaic.version = 11 : i64} {
  func.func @attn_pool_kernel(%arg0: i32, %arg1: memref<2x16x32xbf16, #tpu.memory_space<vmem>>, %arg2: memref<2x16xf32, #tpu.memory_space<vmem>>, %arg3: memref<32x32xbf16, #tpu.memory_space<vmem>>, %arg4: memref<1x32xf32, #tpu.memory_space<vmem>>, %arg5: memref<2x32xf32, #tpu.memory_space<vmem>>) attributes {dimension_semantics = [#tpu.dimension_semantics<parallel>], iteration_bounds = array<i64: 1>, scalar_prefetch = 0 : i64, scratch_operands = 0 : i64, tpu.core_type = #tpu.core_type<tc>, window_params = [{transform_indices = @transform_0, window_bounds = array<i64: 2, 16, 32>}, {transform_indices = @transform_1, window_bounds = array<i64: 2, 16>}, {pipeline_mode = #tpu.pipeline_mode<synchronous>, transform_indices = @transform_2, window_bounds = array<i64: 32, 32>}, {pipeline_mode = #tpu.pipeline_mode<synchronous>, transform_indices = @transform_3, window_bounds = array<i64: 1, 32>}, {transform_indices = @transform_4, window_bounds = array<i64: 2, 32>}]} {
    %c0 = arith.constant 0 : index
    %c0_0 = arith.constant 0 : index
    %c0_1 = arith.constant 0 : index
    %0 = vector.load %arg1[%c0, %c0_0, %c0_1] : memref<2x16x32xbf16, #tpu.memory_space<vmem>>, vector<2x16x32xbf16>
    %1 = vector.shape_cast %0 : vector<2x16x32xbf16> to vector<32x32xbf16>
    %c0_2 = arith.constant 0 : index
    %c0_3 = arith.constant 0 : index
    %2 = vector.load %arg3[%c0_2, %c0_3] : memref<32x32xbf16, #tpu.memory_space<vmem>>, vector<32x32xbf16>
    %cst = arith.constant dense<0.000000e+00> : vector<32x32xf32>
    %3 = tpu.matmul %1, %2, %cst {dimension_numbers = #tpu.dot_dimension_numbers<[1], [0], [0], [1], [0, 0, 1, 1], [], []>} : vector<32x32xbf16>, vector<32x32xbf16>, vector<32x32xf32> -> vector<32x32xf32>
    %4 = math.tanh %3 : vector<32x32xf32>
    %5 = vector.shape_cast %4 : vector<32x32xf32> to vector<2x16x32xf32>
    %c0_4 = arith.constant 0 : index
    %c0_5 = arith.constant 0 : index
    %6 = vector.load %arg4[%c0_4, %c0_5] : memref<1x32xf32, #tpu.memory_space<vmem>>, vector<1x32xf32>
    %7 = vector.shape_cast %6 : vector<1x32xf32> to vector<1x1x32xf32>
    %8 = vector.broadcast %7 : vector<1x1x32xf32> to vector<2x16x32xf32>
    %9 = arith.mulf %5, %8 : vector<2x16x32xf32>
    %cst_6 = arith.constant dense<0.000000e+00> : vector<2x16xf32>
    %10 = vector.multi_reduction <add>, %9, %cst_6 [2] : vector<2x16x32xf32> to vector<2x16xf32>
    %c0_7 = arith.constant 0 : index
    %c0_8 = arith.constant 0 : index
    %11 = vector.load %arg2[%c0_7, %c0_8] : memref<2x16xf32, #tpu.memory_space<vmem>>, vector<2x16xf32>
    %12 = arith.addf %10, %11 : vector<2x16xf32>
    %cst_9 = arith.constant dense<0xFF800000> : vector<2xf32>
    %13 = vector.multi_reduction <maximumf>, %12, %cst_9 [1] : vector<2x16xf32> to vector<2xf32>
    %14 = vector.shape_cast %13 : vector<2xf32> to vector<2x1xf32>
    %15 = vector.broadcast %14 : vector<2x1xf32> to vector<2x16xf32>
    %16 = arith.subf %12, %15 : vector<2x16xf32>
    %17 = math.exp %16 : vector<2x16xf32>
    %cst_10 = arith.constant dense<0.000000e+00> : vector<2xf32>
    %18 = vector.multi_reduction <add>, %17, %cst_10 [1] : vector<2x16xf32> to vector<2xf32>
    %19 = vector.shape_cast %18 : vector<2xf32> to vector<2x1xf32>
    %20 = tpu.reciprocal %19 {approx = true} : vector<2x1xf32> -> vector<2x1xf32>
    %21 = vector.broadcast %20 : vector<2x1xf32> to vector<2x16xf32>
    %22 = arith.mulf %17, %21 : vector<2x16xf32>
    %23 = arith.extf %0 : vector<2x16x32xbf16> to vector<2x16x32xf32>
    %24 = vector.shape_cast %22 : vector<2x16xf32> to vector<2x16x1xf32>
    %25 = vector.broadcast %24 : vector<2x16x1xf32> to vector<2x16x32xf32>
    %26 = arith.mulf %23, %25 : vector<2x16x32xf32>
    %cst_11 = arith.constant dense<0.000000e+00> : vector<2x32xf32>
    %27 = vector.multi_reduction <add>, %26, %cst_11 [1] : vector<2x16x32xf32> to vector<2x32xf32>
    %c0_12 = arith.constant 0 : index
    %c0_13 = arith.constant 0 : index
    %28 = vector.load %arg5[%c0_12, %c0_13] : memref<2x32xf32, #tpu.memory_space<vmem>>, vector<2x32xf32>
    tpu.vector_store %arg5[%c0_12, %c0_13], %27 {strides = array<i32>} : memref<2x32xf32, #tpu.memory_space<vmem>>, vector<2x32xf32>,
    return
  }
  func.func @transform_0(%arg0: i32) -> (i32, i32, i32) {
    %c0_i32 = arith.constant 0 : i32
    %c0_i32_0 = arith.constant 0 : i32
    %c0_i32_1 = arith.constant 0 : i32
    return %arg0, %c0_i32, %c0_i32_0 : i32, i32, i32
  }
  func.func @transform_1(%arg0: i32) -> (i32, i32) {
    %c0_i32 = arith.constant 0 : i32
    %c0_i32_0 = arith.constant 0 : i32
    return %arg0, %c0_i32 : i32, i32
  }
  func.func @transform_2(%arg0: i32) -> (i32, i32) {
    %c0_i32 = arith.constant 0 : i32
    %c0_i32_0 = arith.constant 0 : i32
    %c0_i32_1 = arith.constant 0 : i32
    return %c0_i32, %c0_i32_0 : i32, i32
  }
  func.func @transform_3(%arg0: i32) -> (i32, i32) {
    %c0_i32 = arith.constant 0 : i32
    %c0_i32_0 = arith.constant 0 : i32
    %c0_i32_1 = arith.constant 0 : i32
    return %c0_i32, %c0_i32_0 : i32, i32
  }
  func.func @transform_4(%arg0: i32) -> (i32, i32) {
    %c0_i32 = arith.constant 0 : i32
    %c0_i32_0 = arith.constant 0 : i32
    return %arg0, %c0_i32 : i32, i32
  }
}

</mosaic_0001>

<bundles_post_ra>
// kernel: tpu_custom_call.1
= control target key start
LH: loop header
LB: loop body
LE: loop exit
PB: predicated region body
PF: predicated region fallthrough
CT: control target
= control target key end

     0   :  { %9 = vsyncpa [#allocation3], 0  ;;  %s562_s0 = inlined_call_operand.hbm [shape: bf16[2,16,32], index: 0, kind: input, shape index: {}]   ;;  %s563_s1 = inlined_call_operand.hbm [shape: f32[2,16], index: 1, kind: input, shape index: {}]   ;;  %s564_s2 = inlined_call_operand.hbm [shape: bf16[32,32], index: 2, kind: input, shape index: {}]   ;;  %s565_s3 = inlined_call_operand.vmem [shape: f32[1,32], index: 3, kind: input, shape index: {}]   ;;  %s566_s4 = inlined_call_operand.hbm [shape: f32[2,32], index: 4, kind: output, shape index: {}]  }
   0x1   :  { %10 = vsyncpa [#allocation6], 0  ;;  %s30_s17 = sshll.u32 %s563_s1, 4  ;;  %s31_s17 = int_to_ptr.hbm [resolvable:$true] %s30_s17 }
   0x2   :  { %11 = vsyncpa [#allocation4], 0  ;;  %s496_s18 = smov [#allocation5]   ;;  %s16_s22 = sshll.u32 %s562_s0, 4  ;;  %s17_s22 = int_to_ptr.hbm [resolvable:$true] %s16_s22 }
   0x3   :  { %s32_s19 = sshll.u32 %s496_s18, 4  ;;  %s497_s23 = smov [#allocation2]   ;;  %s33_s19 = int_to_ptr.vmem [resolvable:$true] %s32_s19 }
   0x4   :  { %35 = dma.hbm_to_vmem [thread:$0]  %s31_s17, 32, %s33_s19, [#allocation6]  }
   0x5   :  { %s18_s24 = sshll.u32 %s497_s23, 4  ;;  %s498_s25 = smov 64   ;;  %s19_s24 = int_to_ptr.vmem [resolvable:$true] %s18_s24 }
   0x6   :  { %s499_s26 = smov 4   ;;  %s40_s1 = sshll.u32 %s564_s2, 4  ;;  %s41_s1 = int_to_ptr.hbm [resolvable:$true] %s40_s1 }
   0x7   :  { %24 = dma.hbm_to_vmem [thread:$0]  %s17_s22, 256, %s19_s24, [#allocation3], %s498_s25, %s498_s25, %s499_s26  }
   0x8   :  { %s500_s29 = smov [#allocation7]  }
   0x9   :  { %s42_s30 = sshll.u32 %s500_s29, 4  ;;  %s43_s30 = int_to_ptr.vmem [resolvable:$true] %s42_s30 }
   0xa   :  { %48 = dma.hbm_to_vmem [thread:$0]  %s41_s1, 256, %s43_s30, [#allocation6], %s498_s25, %s498_s25, %s499_s26  }
   0xb   :  { %490 = dma.done.wait [#allocation3], 256  }
   0xc   :  { %491 = vsyncadd [#allocation3], 4294967040 }
   0xd   :  { %492 = dma.done.wait [#allocation6], 288  }
   0xe   :  { %493 = vsyncadd [#allocation6], 4294967008  ;;  %v358_v0 = vld [vmem:[#allocation7 + $0x8] sm:$0xff]  ;;  %v357_v1 = vld [vmem:[#allocation7] sm:$0xff]  ;;  %vm94_vm0 = vcmask 261120   ;;  %v147_v4 = vlaneseq  ;;  %v501_v27 = vmov 0  }
   0xf   :  { %107 = vmatpush.bf16.msra.mxu0 %v358_v0  ;;  %359 = vmatpush.bf16.msra.mxu1 %v358_v0  ;;  %v355_v2 = vld [vmem:[#allocation2] sm:$0xff]  ;;  %v356_v3 = vld [vmem:[#allocation2 + $0x8] sm:$0xff]  ;;  %v144_v7 = vld [vmem:[#allocation5] sm:$0x3]  ;;  %vm201_vm1 = vcmask 130112   ;;  %vm206_vm2 = vcmask 1041409  }
  0x10   :  { %v148_v5 = vshrl.u32 %v147_v4, 7  ;;  %v146_v8 = vperm.slane %v144_v7, 0  ;;  %v375_v11 = vld [vmem:[%s565_s3] ss:$0 sm:$0xff]  ;;  %v159_v26 = vperm.slane %v144_v7, 1  ;;  %v197_v43 = vand.u32 127, %v147_v4 }
  0x11   :  { %vm209_vm3 = vcmask 123904   ;;  %s502_s3 = smov [#allocation8]   ;;  %s326_s8 = sshll.u32 %s566_s4, 4  ;;  %vm317_vm4 = vcmask 254976   ;;  %s327_s8 = int_to_ptr.hbm [resolvable:$true] %s326_s8 }
  0x12   :  { %368 = vset.pattern.permute.xlu2 %v148_v5  ;;  %370 = vset.pattern.permute.xlu0 %v148_v5  ;;  %v155_v6 = vadd.s32 8, %v148_v5  ;;  %v199_v44 = vadd.s32 4294967288, %v197_v43  ;;  %s324_s5 = sshll.u32 %s502_s3, 4  ;;  %s325_s5 = int_to_ptr.vmem [resolvable:$true] %s324_s5 }
  0x13   :  { %108 = vmatpush.bf16.msra.mxu0 %v357_v1  ;;  %360 = vmatpush.bf16.msra.mxu1 %v357_v1 }
  0x14   :  { %371 = vset.pattern.permute.xlu1 %v155_v6 }
  0x16   :  { %353 = vmatmul.msk.bf16.vlgmr.msra.gmra.mxu0 %vm94_vm0, %v355_v2  ;;  %354 = vmatmul.msk.bf16.vlgmr.msra.gmra.mxu1 %vm94_vm0, %v356_v3 }
  0x1a   :  { %151 = vperm.xlu2 %368, %v146_v8  }
  0x22   :  { %369 = vset.pattern.permute.xlu2 %v155_v6 }
  0x2a   :  { %157 = vperm.xlu2 %369, %v146_v8  }
  0x32   :  { %372 = vset.pattern.permute.xlu2 %v501_v27 }
  0x74   :  { %v152_v28 = vpop.permute.xlu2 %151 }
  0x84   :  { %v158_v35 = vpop.permute.xlu2 %157 }
  0x93   :  { %v110_v9 = vpop.f32.mrf.mxu0  ;;  %v115_v10 = vpop.f32.mrf.mxu1 }
  0x94   :  { %376 = vtanh.f32 %v110_v9 }
  0x95   :  { %378 = vtanh.f32 %v115_v10 }
  0x9a   :  { %v377_v12 = vpop.eup %376 }
  0x9b   :  { %v379_v13 = vpop.eup %378  ;;  %v112_v14 = vpop.f32.mrf.mxu0  ;;  %v128_v16 = vmul.f32 %v377_v12, %v375_v11 }
  0x9c   :  { %v117_v15 = vpop.f32.mrf.mxu1  ;;  %380 = vtanh.f32 %v112_v14  ;;  %v130_v17 = vmul.f32 %v379_v13, %v375_v11 }
  0x9d   :  { %382 = vtanh.f32 %v117_v15  ;;  %v132_v18 = vsel %vm94_vm0, %v128_v16, 0.0 }
  0x9e   :  { %v138_v19 = vsel %vm94_vm0, %v130_v17, 0.0  ;;  %133 = vadd.xlane.f32.xlu0 %v132_v18 }
  0x9f   :  { %139 = vadd.xlane.f32.xlu1 %v138_v19 }
  0xa2   :  { %v381_v20 = vpop.eup %380 }
  0xa3   :  { %v383_v21 = vpop.eup %382  ;;  %v129_v22 = vmul.f32 %v381_v20, %v375_v11 }
  0xa4   :  { %v131_v23 = vmul.f32 %v383_v21, %v375_v11 }
  0xa5   :  { %v135_v24 = vsel %vm94_vm0, %v129_v22, 0.0 }
  0xa6   :  { %v141_v25 = vsel %vm94_vm0, %v131_v23, 0.0  ;;  %136 = vadd.xlane.f32.xlu0 %v135_v24 }
  0xa7   :  { %142 = vadd.xlane.f32.xlu1 %v141_v25 }
  0xba   :  { %164 = vperm.xlu0 %370, %v159_v26  }
  0xc0   :  { %170 = vperm.xlu1 %371, %v159_v26   ;;  %v64_v26 = vld [vmem:[#allocation2] sm:$0xff]  }
  0xc2   :  { %373 = vset.pattern.permute.xlu0 %v501_v27 }
  0xc8   :  { %374 = vset.pattern.permute.xlu1 %v501_v27  ;;  %v268_v27 = vunpack.c.h.bf16 %v64_v26 }
 0x111   :  { %v134_v29 = vpop.xlane.xlu0 %133 }
 0x112   :  { %v176_v30 = vadd.f32 %v152_v28, %v134_v29  ;;  %v140_v32 = vpop.xlane.xlu1 %139  ;;  %v267_v28 = vunpack.c.l.bf16 %v64_v26 }
 0x114   :  { %185 = vperm.xlu2 %372, %v176_v30  }
 0x119   :  { %v137_v31 = vpop.xlane.xlu0 %136 }
 0x11a   :  { %v143_v36 = vpop.xlane.xlu1 %142  ;;  %v177_v37 = vadd.f32 %v158_v35, %v137_v31  ;;  %v67_v35 = vld [vmem:[#allocation2 + $0x8] sm:$0xff]  }
 0x12c   :  { %v165_v33 = vpop.permute.xlu0 %164 }
 0x12d   :  { %v178_v34 = vadd.f32 %v165_v33, %v140_v32 }
 0x12f   :  { %191 = vperm.xlu2 %372, %v178_v34  }
 0x132   :  { %v171_v38 = vpop.permute.xlu1 %170 }
 0x133   :  { %v179_v39 = vadd.f32 %v171_v38, %v143_v36  ;;  %v270_v36 = vunpack.c.h.bf16 %v67_v35 }
 0x137   :  { %188 = vperm.xlu2 %372, %v177_v37  }
 0x13f   :  { %194 = vperm.xlu2 %372, %v179_v39  }
 0x16e   :  { %v186_v40 = vpop.permute.xlu2 %185 }
 0x16f   :  { %v198_v47 = vperm.slane %v186_v40, %v197_v43 }
 0x189   :  { %v192_v41 = vpop.permute.xlu2 %191 }
 0x18a   :  { %v203_v48 = vperm.slane %v192_v41, %v197_v43 }
 0x191   :  { %v189_v42 = vpop.permute.xlu2 %188 }
 0x192   :  { %v200_v45 = vperm.slane %v189_v42, %v199_v44 }
 0x194   :  { %v202_v50 = vsel %vm201_vm1, %v200_v45, %v198_v47 }
 0x199   :  { %v195_v46 = vpop.permute.xlu2 %194 }
 0x19a   :  { %v204_v49 = vperm.slane %v195_v46, %v199_v44 }
 0x19c   :  { %v205_v51 = vsel %vm201_vm1, %v204_v49, %v203_v48 }
 0x19d   :  { %v207_v52 = vsel %vm206_vm2, %v205_v51, %v202_v50 }
 0x19e   :  { %v210_v53 = vsel %vm209_vm3, %v207_v52, -inf }
 0x19f   :  { %211 = vmax.xlane.f32.xlu1 %v210_v53 }
 0x212   :  { %v212_v54 = vpop.xlane.xlu1 %211 }
 0x213   :  { %v214_v55 = vperm.slane %v212_v54, 0  ;;  %v215_v56 = vperm.slane %v212_v54, 1 }
 0x215   :  { %v218_v57 = vsub.f32 %v176_v30, %v214_v55  ;;  %v219_v58 = vsub.f32 %v177_v37, %v214_v55  ;;  %v220_v61 = vsub.f32 %v178_v34, %v215_v56  ;;  %v221_v1 = vsub.f32 %v179_v39, %v215_v56 }
 0x216   :  { %v269_v39 = vunpack.c.l.bf16 %v67_v35 }
 0x217   :  { %v222_v59 = vmul.f32 1.442695, %v218_v57  ;;  %v224_v60 = vmul.f32 1.442695, %v219_v58  ;;  %v226_v62 = vmul.f32 1.442695, %v220_v61 }
 0x218   :  { %v228_v2 = vmul.f32 1.442695, %v221_v1 }
 0x219   :  { %384 = vpow2.f32 %v222_v59 }
 0x21a   :  { %386 = vpow2.f32 %v224_v60 }
 0x21b   :  { %388 = vpow2.f32 %v226_v62 }
 0x21c   :  { %390 = vpow2.f32 %v228_v2 }
 0x21f   :  { %v385_v63 = vpop.eup %384 }
 0x220   :  { %v387_v0 = vpop.eup %386  ;;  %235 = vperm.xlu2 %372, %v385_v63  }
 0x221   :  { %238 = vperm.xlu0 %373, %v387_v0   ;;  %v389_v3 = vpop.eup %388 }
 0x222   :  { %v391_v4 = vpop.eup %390 }
 0x228   :  { %241 = vperm.xlu2 %372, %v389_v3  }
 0x230   :  { %244 = vperm.xlu2 %372, %v391_v4  }
 0x27a   :  { %v236_v5 = vpop.permute.xlu2 %235 }
 0x27b   :  { %v246_v10 = vperm.slane %v236_v5, %v197_v43 }
 0x282   :  { %v242_v6 = vpop.permute.xlu2 %241 }
 0x283   :  { %v249_v11 = vperm.slane %v242_v6, %v197_v43 }
 0x28a   :  { %v245_v7 = vpop.permute.xlu2 %244 }
 0x28b   :  { %v250_v8 = vperm.slane %v245_v7, %v199_v44 }
 0x28d   :  { %v251_v14 = vsel %vm201_vm1, %v250_v8, %v249_v11 }
 0x293   :  { %v239_v9 = vpop.permute.xlu0 %238 }
 0x294   :  { %v247_v12 = vperm.slane %v239_v9, %v199_v44 }
 0x296   :  { %v248_v13 = vsel %vm201_vm1, %v247_v12, %v246_v10 }
 0x297   :  { %v252_v15 = vsel %vm206_vm2, %v251_v14, %v248_v13 }
 0x298   :  { %v254_v16 = vsel %vm209_vm3, %v252_v15, 0.0 }
 0x299   :  { %255 = vadd.xlane.f32.xlu0 %v254_v16 }
 0x30c   :  { %v256_v17 = vpop.xlane.xlu0 %255 }
 0x30d   :  { %392 = vrcp.f32 %v256_v17 }
 0x313   :  { %v393_v18 = vpop.eup %392 }
 0x314   :  { %v260_v19 = vperm.slane %v393_v18, 1  ;;  %v259_v20 = vperm.slane %v393_v18, 0 }
 0x316   :  { %v265_v21 = vmul.f32 %v389_v3, %v260_v19  ;;  %v263_v22 = vmul.f32 %v385_v63, %v259_v20  ;;  %v264_v23 = vmul.f32 %v387_v0, %v259_v20  ;;  %v266_v24 = vmul.f32 %v391_v4, %v260_v19 }
 0x318   :  { %283 = vperm.xlu1 %374, %v265_v21   ;;  %273 = vperm.xlu2 %372, %v263_v22  }
 0x320   :  { %278 = vperm.xlu2 %372, %v264_v23  }
 0x328   :  { %288 = vperm.xlu2 %372, %v266_v24  }
 0x372   :  { %v274_v25 = vpop.permute.xlu2 %273 }
 0x373   :  { %v291_v31 = vmul.f32 %v274_v25, %v267_v28 }
 0x375   :  { %v295_v33 = vsel %vm94_vm0, %v291_v31, 0.0 }
 0x37a   :  { %v279_v29 = vpop.permute.xlu2 %278 }
 0x37b   :  { %v292_v30 = vmul.f32 %v279_v29, %v268_v27 }
 0x37d   :  { %v296_v32 = vsel %vm94_vm0, %v292_v30, 0.0 }
 0x37e   :  { %v297_v34 = vadd.f32 %v296_v32, %v295_v33 }
 0x380   :  { %v298_v37 = vrot.slane %v297_v34, 4 }
 0x382   :  { %v289_v38 = vpop.permute.xlu2 %288  ;;  %v299_v41 = vadd.f32 %v298_v37, %v297_v34 }
 0x383   :  { %v294_v40 = vmul.f32 %v289_v38, %v270_v36 }
 0x384   :  { %v300_v46 = vrot.slane %v299_v41, 2 }
 0x385   :  { %v305_v44 = vsel %vm94_vm0, %v294_v40, 0.0 }
 0x386   :  { %v301_v49 = vadd.f32 %v300_v46, %v299_v41 }
 0x388   :  { %v302_v52 = vrot.slane %v301_v49, 1 }
 0x38a   :  { %v284_v42 = vpop.permute.xlu1 %283  ;;  %v303_v55 = vadd.f32 %v302_v52, %v301_v49 }
 0x38b   :  { %v293_v43 = vmul.f32 %v284_v42, %v269_v39 }
 0x38d   :  { %v304_v45 = vsel %vm94_vm0, %v293_v43, 0.0 }
 0x38e   :  { %v306_v47 = vadd.f32 %v305_v44, %v304_v45 }
 0x390   :  { %v307_v48 = vrot.slane %v306_v47, 4 }
 0x392   :  { %v308_v50 = vadd.f32 %v307_v48, %v306_v47 }
 0x394   :  { %v309_v51 = vrot.slane %v308_v50, 2 }
 0x396   :  { %v310_v53 = vadd.f32 %v309_v51, %v308_v50 }
 0x398   :  { %v311_v54 = vrot.slane %v310_v53, 1 }
 0x39a   :  { %v312_v56 = vadd.f32 %v311_v54, %v310_v53 }
 0x39c   :  { %v315_v57 = vsel %vm206_vm2, %v312_v56, %v303_v55 }
 0x39d   :  { %318 = vst.msk [vmem:[#allocation8] sm:$0x3] %vm317_vm4, %v315_v57 }
 0x39e   :  { %329 = dma.vmem_to_hbm [thread:$0]  %s325_s5, 32, %s327_s8, [#allocation4]  }
 0x39f   :  { %494 = dma.done.wait [#allocation4], 32  }
 0x3a0   :  { %495 = vsyncadd [#allocation4], 4294967264 }
 0x3a1   :  { %334 = vsyncpa [#allocation3], 1 }
 0x3a2   :  { %335 = vsyncpa [#allocation6], 1 }
 0x3a3   :  { %336 = vsyncpa [#allocation4], 1 }

</bundles_post_ra>
